<compile_context>
chip_gen: v7x
topology: tpu7x:2x2x1
jax: 0.10.0
libtpu: 0.0.40
codegen_flags: <defaults>
</compile_context>

<pallas_src>
import functools

import jax
import jax.numpy as jnp
from jax import lax
from jax.experimental import pallas as pl
from jax.experimental.pallas import tpu as pltpu


def _pick_tile(dim, pref):
    """Largest tile <= pref that divides dim (falls back to the whole dim)."""
    if dim <= pref:
        return dim
    t = pref
    while dim % t != 0:
        t //= 2
    return t


# ---------------------------------------------------------------------------
# Kernel 1: tiled linear  y = x @ W + b
# grid = (M/tm, N/tn, K/tk), f32 VMEM accumulator, init/finalize on the k axis,
# M/N axes parallel (megacore-shardable), K axis arbitrary (reduction, last).
# ---------------------------------------------------------------------------
def _linear_kernel(x_ref, w_ref, b_ref, o_ref, acc_ref):
    k = pl.program_id(2)

    @pl.when(k == 0)
    def _init():
        acc_ref[...] = jnp.zeros_like(acc_ref)

    acc_ref[...] += jnp.dot(x_ref[...], w_ref[...],
                            preferred_element_type=jnp.float32)

    @pl.when(k == pl.num_programs(2) - 1)
    def _finalize():
        o_ref[...] = (acc_ref[...] + b_ref[...].astype(jnp.float32)).astype(o_ref.dtype)


def pallas_linear(x2d, w, b, *, tm=128, tn=256, tk=512):
    """x2d: (M, K), w: (K, N), b: (N,) -> (M, N)."""
    M, K = x2d.shape
    Kw, N = w.shape
    assert Kw == K
    tm = _pick_tile(M, tm)
    tn = _pick_tile(N, tn)
    tk = _pick_tile(K, tk)
    b2 = b.reshape(1, N)
    grid = (M // tm, N // tn, K // tk)
    return pl.pallas_call(
        _linear_kernel,
        out_shape=jax.ShapeDtypeStruct((M, N), x2d.dtype),
        grid=grid,
        in_specs=[
            pl.BlockSpec((tm, tk), lambda i, j, k: (i, k)),
            pl.BlockSpec((tk, tn), lambda i, j, k: (k, j)),
            pl.BlockSpec((1, tn), lambda i, j, k: (0, j)),
        ],
        out_specs=pl.BlockSpec((tm, tn), lambda i, j, k: (i, j)),
        scratch_shapes=[pltpu.VMEM((tm, tn), jnp.float32)],
        compiler_params=pltpu.CompilerParams(
            dimension_semantics=("parallel", "parallel", "arbitrary")),
    )(x2d, w, b2)


# ---------------------------------------------------------------------------
# Kernel 2: flash-style attention over the fused qkv buffer.
# grid = (B, N/tq, N/tkv); all heads of one (batch, q-tile) are processed per
# step (lane-dense E-wide output block), K/V is tiled along the last grid axis
# with running max/sum scratch (online softmax).  The qkv array is passed three
# times with different BlockSpecs so q/k/v are sliced out of the (B, N, 3E)
# slab by index_map (column blocks 0/1/2 of width E) — no wrapper transposes.
# ---------------------------------------------------------------------------
def _flash_attn_kernel(q_ref, k_ref, v_ref, o_ref, m_ref, l_ref, acc_ref, *,
                       num_heads, head_dim, scale):
    kv = pl.program_id(2)

    @pl.when(kv == 0)
    def _init():
        m_ref[...] = jnp.full_like(m_ref, -jnp.inf)
        l_ref[...] = jnp.zeros_like(l_ref)
        acc_ref[...] = jnp.zeros_like(acc_ref)

    for h in range(num_heads):  # static unroll over heads (few, lane-aligned slices)
        cols = slice(h * head_dim, (h + 1) * head_dim)
        q = q_ref[0, :, cols] * scale          # fold 1/sqrt(d) into q (N*d mults)
        k = k_ref[0, :, cols]
        v = v_ref[0, :, cols]

        # q @ k^T without materializing k.T (contract on the d axis of both).
        s = lax.dot_general(q, k, (((1,), (1,)), ((), ())),
                            preferred_element_type=jnp.float32)   # (tq, tkv)

        m_prev = m_ref[h]                                          # (tq, 1)
        l_prev = l_ref[h]
        m_new = jnp.maximum(m_prev, jnp.max(s, axis=-1, keepdims=True))
        alpha = jnp.exp(m_prev - m_new)
        p = jnp.exp(s - m_new)
        l_ref[h] = alpha * l_prev + jnp.sum(p, axis=-1, keepdims=True)
        acc_ref[:, cols] = alpha * acc_ref[:, cols] + jnp.dot(
            p.astype(v.dtype), v, preferred_element_type=jnp.float32)
        m_ref[h] = m_new

    @pl.when(kv == pl.num_programs(2) - 1)
    def _finalize():
        for h in range(num_heads):
            cols = slice(h * head_dim, (h + 1) * head_dim)
            inv_l = pl.reciprocal(l_ref[h], approx=True)   # EUP slot, not VALU
            o_ref[0, :, cols] = (acc_ref[:, cols] * inv_l).astype(o_ref.dtype)


def pallas_attention_fused_heads(qkv, num_heads, out_dtype, *, tq=256, tkv=512):
    """qkv: (B, N, 3E) with column layout [q(H*d) | k(H*d) | v(H*d)] -> (B, N, E)."""
    B, N, threeE = qkv.shape
    E = threeE // 3
    d = E // num_heads
    tq = _pick_tile(N, tq)
    tkv = _pick_tile(N, tkv)
    scale = 1.0 / (d ** 0.5)   # F.scaled_dot_product_attention default
    kernel = functools.partial(_flash_attn_kernel, num_heads=num_heads,
                               head_dim=d, scale=scale)
    grid = (B, N // tq, N // tkv)
    return pl.pallas_call(
        kernel,
        out_shape=jax.ShapeDtypeStruct((B, N, E), out_dtype),
        grid=grid,
        in_specs=[
            pl.BlockSpec((1, tq, E), lambda b, qi, kv: (b, qi, 0)),   # q: cols [0, E)
            pl.BlockSpec((1, tkv, E), lambda b, qi, kv: (b, kv, 1)),  # k: cols [E, 2E)
            pl.BlockSpec((1, tkv, E), lambda b, qi, kv: (b, kv, 2)),  # v: cols [2E, 3E)
        ],
        out_specs=pl.BlockSpec((1, tq, E), lambda b, qi, kv: (b, qi, 0)),
        scratch_shapes=[
            pltpu.VMEM((num_heads, tq, 1), jnp.float32),   # running max per head
            pltpu.VMEM((num_heads, tq, 1), jnp.float32),   # running sum per head
            pltpu.VMEM((tq, E), jnp.float32),              # merged-head accumulator
        ],
        compiler_params=pltpu.CompilerParams(
            dimension_semantics=("parallel", "parallel", "arbitrary")),
    )(qkv, qkv, qkv)


# ---------------------------------------------------------------------------
# MultiheadAttention forward (reshapes only in the wrapper — no transposes)
# ---------------------------------------------------------------------------
def multihead_attention(x, params, num_heads):
    B, N, Din = x.shape
    E = params["w_proj"].shape[0]

    # qkv projection (tiled GEMM). (B*N, 3E) -> (B, N, 3E) is a free reshape.
    qkv = pallas_linear(x.reshape(B * N, Din), params["w_qkv"], params["b_qkv"])
    qkv = qkv.reshape(B, N, 3 * E)

    # Attention: head split/merge handled by BlockSpec column offsets + in-kernel
    # lane-aligned head slices; output is already the merged (B, N, E) layout.
    attn = pallas_attention_fused_heads(qkv, num_heads, x.dtype)

    # Output projection (tiled GEMM).
    out = pallas_linear(attn.reshape(B * N, E), params["w_proj"], params["b_proj"])
    return out.reshape(B, N, E)
    # TODO(synk): attn_drop / proj_drop / out_drop are 0.0 in eval mode, gamma1 is
    # Identity (use_layer_scale=False, layer_scale_init_value=0) and
    # v_shortcut=False, so those branches are omitted.


# ---------------------------------------------------------------------------
# Plain-JAX reference (for correctness check)
# ---------------------------------------------------------------------------
def reference(x, params, num_heads):
    B, N, Din = x.shape
    E = params["w_proj"].shape[0]
    d = E // num_heads
    qkv = x.reshape(B * N, Din) @ params["w_qkv"] + params["b_qkv"]
    qkv = qkv.reshape(B, N, 3, num_heads, d).transpose(2, 0, 3, 1, 4)
    q, k, v = qkv[0], qkv[1], qkv[2]
    s = jnp.einsum("bhqd,bhkd->bhqk", q, k) / (d ** 0.5)
    p = jax.nn.softmax(s, axis=-1)
    o = jnp.einsum("bhqk,bhkd->bhqd", p, v)
    o = o.transpose(0, 2, 1, 3).reshape(B * N, E)
    return (o @ params["w_proj"] + params["b_proj"]).reshape(B, N, E)


if __name__ == "__main__":
    # Small but (8,128)-aligned shapes so per-head slices are lane-tile aligned.
    B, N = 2, 128
    embed_dims, num_heads = 256, 2          # head_dim = 128
    input_dims = embed_dims                 # input_dims=None -> embed_dims

    key = jax.random.PRNGKey(0)
    kx, k1, k2, k3, k4 = jax.random.split(key, 5)

    x = jax.random.normal(kx, (B, N, input_dims), dtype=jnp.float32)

    # Deterministic parameter init (nn.Linear shapes, stored as (in, out)).
    params = {
        "w_qkv": jax.random.normal(k1, (input_dims, 3 * embed_dims), jnp.float32) * 0.02,
        "b_qkv": jax.random.normal(k2, (3 * embed_dims,), jnp.float32) * 0.02,
        "w_proj": jax.random.normal(k3, (embed_dims, embed_dims), jnp.float32) * 0.02,
        "b_proj": jax.random.normal(k4, (embed_dims,), jnp.float32) * 0.02,
    }

    out = multihead_attention(x, params, num_heads)
    out = jax.block_until_ready(out)

    ref = reference(x, params, num_heads)
    assert out.shape == (B, N, embed_dims)
    # Tolerance covers online-softmax reordering + approx EUP reciprocal.
    assert jnp.allclose(out, ref, rtol=5e-3, atol=1e-3), "mismatch vs reference"

    print("KERNEL_OK")
</pallas_src>

<mosaic_0001>
module attributes {stable_mosaic.version = 11 : i64} {
  func.func @_linear_kernel(%arg0: i32, %arg1: i32, %arg2: i32, %arg3: memref<128x256xf32, #tpu.memory_space<vmem>>, %arg4: memref<256x256xf32, #tpu.memory_space<vmem>>, %arg5: memref<1x256xf32, #tpu.memory_space<vmem>>, %arg6: memref<128x256xf32, #tpu.memory_space<vmem>>, %arg7: memref<128x256xf32, #tpu.memory_space<vmem>>) attributes {dimension_semantics = [#tpu.dimension_semantics<parallel>, #tpu.dimension_semantics<parallel>, #tpu.dimension_semantics<arbitrary>], iteration_bounds = array<i64: 2, 3, 1>, scalar_prefetch = 0 : i64, scratch_operands = 1 : i64, tpu.core_type = #tpu.core_type<tc>, window_params = [{transform_indices = @transform_0, window_bounds = array<i64: 128, 256>}, {transform_indices = @transform_1, window_bounds = array<i64: 256, 256>}, {transform_indices = @transform_2, window_bounds = array<i64: 1, 256>}, {transform_indices = @transform_3, window_bounds = array<i64: 128, 256>}]} {
    %c0_i32 = arith.constant 0 : i32
    %0 = arith.cmpi eq, %arg2, %c0_i32 : i32
    %1 = arith.extui %0 : i1 to i32
    %c0_i32_0 = arith.constant 0 : i32
    %2 = arith.cmpi ne, %1, %c0_i32_0 : i32
    scf.if %2 {
      %cst_10 = arith.constant 0.000000e+00 : f32
      %12 = vector.broadcast %cst_10 : f32 to vector<128x256xf32>
      %c0_11 = arith.constant 0 : index
      %c0_12 = arith.constant 0 : index
      %13 = vector.load %arg7[%c0_11, %c0_12] : memref<128x256xf32, #tpu.memory_space<vmem>>, vector<128x256xf32>
      tpu.vector_store %arg7[%c0_11, %c0_12], %12 {strides = array<i32>} : memref<128x256xf32, #tpu.memory_space<vmem>>, vector<128x256xf32>,
    } else {
    }
    %c0 = arith.constant 0 : index
    %c0_1 = arith.constant 0 : index
    %3 = vector.load %arg7[%c0, %c0_1] : memref<128x256xf32, #tpu.memory_space<vmem>>, vector<128x256xf32>
    %c0_2 = arith.constant 0 : index
    %c0_3 = arith.constant 0 : index
    %4 = vector.load %arg3[%c0_2, %c0_3] : memref<128x256xf32, #tpu.memory_space<vmem>>, vector<128x256xf32>
    %c0_4 = arith.constant 0 : index
    %c0_5 = arith.constant 0 : index
    %5 = vector.load %arg4[%c0_4, %c0_5] : memref<256x256xf32, #tpu.memory_space<vmem>>, vector<256x256xf32>
    %cst = arith.constant dense<0.000000e+00> : vector<128x256xf32>
    %6 = tpu.matmul %4, %5, %cst {dimension_numbers = #tpu.dot_dimension_numbers<[1], [0], [0], [1], [0, 0, 1, 1], [], []>} : vector<128x256xf32>, vector<256x256xf32>, vector<128x256xf32> -> vector<128x256xf32>
    %7 = arith.addf %3, %6 : vector<128x256xf32>
    %c0_6 = arith.constant 0 : index
    %c0_7 = arith.constant 0 : index
    %8 = vector.load %arg7[%c0_6, %c0_7] : memref<128x256xf32, #tpu.memory_space<vmem>>, vector<128x256xf32>
    tpu.vector_store %arg7[%c0_6, %c0_7], %7 {strides = array<i32>} : memref<128x256xf32, #tpu.memory_space<vmem>>, vector<128x256xf32>,
    %c0_i32_8 = arith.constant 0 : i32
    %9 = arith.cmpi eq, %arg2, %c0_i32_8 : i32
    %10 = arith.extui %9 : i1 to i32
    %c0_i32_9 = arith.constant 0 : i32
    %11 = arith.cmpi ne, %10, %c0_i32_9 : i32
    scf.if %11 {
      %c0_10 = arith.constant 0 : index
      %c0_11 = arith.constant 0 : index
      %12 = vector.load %arg7[%c0_10, %c0_11] : memref<128x256xf32, #tpu.memory_space<vmem>>, vector<128x256xf32>
      %c0_12 = arith.constant 0 : index
      %c0_13 = arith.constant 0 : index
      %13 = vector.load %arg5[%c0_12, %c0_13] : memref<1x256xf32, #tpu.memory_space<vmem>>, vector<1x256xf32>
      %14 = vector.broadcast %13 : vector<1x256xf32> to vector<128x256xf32>
      %15 = arith.addf %12, %14 : vector<128x256xf32>
      %c0_14 = arith.constant 0 : index
      %c0_15 = arith.constant 0 : index
      %16 = vector.load %arg6[%c0_14, %c0_15] : memref<128x256xf32, #tpu.memory_space<vmem>>, vector<128x256xf32>
      tpu.vector_store %arg6[%c0_14, %c0_15], %15 {strides = array<i32>} : memref<128x256xf32, #tpu.memory_space<vmem>>, vector<128x256xf32>,
    } else {
    }
    return
  }
  func.func @transform_0(%arg0: i32, %arg1: i32, %arg2: i32) -> (i32, i32) {
    %c0_i32 = arith.constant 0 : i32
    return %arg0, %arg2 : i32, i32
  }
  func.func @transform_1(%arg0: i32, %arg1: i32, %arg2: i32) -> (i32, i32) {
    %c0_i32 = arith.constant 0 : i32
    return %arg2, %arg1 : i32, i32
  }
  func.func @transform_2(%arg0: i32, %arg1: i32, %arg2: i32) -> (i32, i32) {
    %c0_i32 = arith.constant 0 : i32
    %c0_i32_0 = arith.constant 0 : i32
    return %c0_i32, %arg1 : i32, i32
  }
  func.func @transform_3(%arg0: i32, %arg1: i32, %arg2: i32) -> (i32, i32) {
    %c0_i32 = arith.constant 0 : i32
    return %arg0, %arg1 : i32, i32
  }
}

</mosaic_0001>

<bundles_post_ra>
// kernel: tpu_custom_call.1
= control target key start
LH: loop header
LB: loop body
LE: loop exit
PB: predicated region body
PF: predicated region fallthrough
CT: control target
= control target key end

     0   :  { %s1959_s0 = inlined_call_operand.hbm [shape: f32[256,256], index: 0, kind: input, shape index: {}]   ;;  %s1960_s1 = inlined_call_operand.hbm [shape: f32[256,768], index: 1, kind: input, shape index: {}]   ;;  %s1961_s2 = inlined_call_operand.vmem [shape: f32[1,768], index: 2, kind: input, shape index: {}]   ;;  %s1962_s3 = inlined_call_operand.hbm [shape: f32[256,768], index: 3, kind: output, shape index: {}]  }
   0x1   :  { %1976 = sst [smem:[#allocation18_spill]] %s1959_s0 }
   0x2   :  { %1977 = sst [smem:[#allocation19_spill]] %s1961_s2 }
   0x3   :  { %1978 = sst [smem:[#allocation20_spill]] %s1962_s3 }
   0x4   :  { %8 = vsyncpa [#allocation4], 0 }
   0x5   :  { %10 = vsyncpa [#allocation4 + $0x1], 0 }
   0x6   :  { %11 = vsyncpa [#allocation7], 0 }
   0x7   :  { %13 = vsyncpa [#allocation7 + $0x1], 0 }
   0x8   :  { %14 = vsyncpa [#allocation5], 0 }
   0x9   :  { %16 = vsyncpa [#allocation5 + $0x1], 0  ;;  %s1431_s12 = smov 0   ;;  %s1433_s13 = smov 0  }
   0xa   :  { %s1435_s14 = smov 0   ;;  %s1437_s15 = smov 0  }
   0xb   :  { %s1439_s16 = smov 0   ;;  %s1441_s17 = smov 0  }
   0xc   :  { %s1443_s18 = smov 0   ;;  %s1445_s19 = smov 0  }
   0xd   :  { %s1447_s20 = smov 0   ;;  %s1449_s21 = smov 0  }
   0xe   :  { %s1451_s22 = smov 0   ;;  %s1453_s23 = smov 0  }
   0xf   :  { %s1455_s24 = smov 0   ;;  %s1457_s25 = smov 0  }
  0x10 LB: > { %1979 = sst [smem:[#allocation12_spill]] %s1388_s22  ;;  %s930_s26 = sadd.s32 4294967295, %s1400_s25   ;;  %s1400_s25 = sphi %s1457_s25, %s22_s25   ;;  %s1396_s24 = sphi %s1455_s24, %s2015_s24   ;;  %s1392_s23 = sphi %s1453_s23, %s2026_s23   ;;  %s1388_s22 = sphi %s1451_s22, %s2013_s22   ;;  %s1384_s21 = sphi %s1449_s21, %s2025_s21   ;;  %s1380_s20 = sphi %s1447_s20, %s2024_s20   ;;  %s1376_s19 = sphi %s1445_s19, %s2023_s19   ;;  %s1372_s18 = sphi %s1443_s18, %s2022_s18   ;;  %s1368_s17 = sphi %s1441_s17, %s2021_s17   ;;  %s1364_s16 = sphi %s1439_s16, %s2020_s16   ;;  %s1360_s15 = sphi %s1437_s15, %s2019_s15   ;;  %s1356_s14 = sphi %s1435_s14, %s2018_s14   ;;  %s1352_s13 = sphi %s1433_s13, %s2017_s13   ;;  %s1348_s12 = sphi %s1431_s12, %s2016_s12  }
  0x11   : > { %1980 = sst [smem:[#allocation13_spill]] %s1396_s24  ;;  %p57_p0 = scmp.ne.s32.totalorder %s1380_s20, %s1376_s19 }
  0x12   : > { %p1964_p1 = scmp.eq.s32.totalorder %s1400_s25, 0  ;;  %p63_p2 = scmp.ne.s32.totalorder %s1376_s19, %s1372_s18 }
  0x13   : > { %p1506_p3 = scmp.eq.s32.totalorder %s930_s26, 0  ;;  %p1510_p4 = scmp.eq.s32.totalorder %s930_s26, 5 }
  0x14   : > { %p59_p5 = por %p1964_p1, %p57_p0  ;;  %p1963_p7 = scmp.lt.s32.totalorder %s1400_s25, 6 }
  0x15   : > { %s1982_s30 = scalar_select %p1510_p4, 1, 0 }
  0x16   : > { %p1518_p6 = por %p1506_p3, %p63_p2  ;;  %s169_s5 = sand.u32 1, %s1380_s20  }
  0x17   : > { %s954_s6 = sshll.u32 %s1396_s24, 12  ;;  %s934_s7 = sshll.u32 %s169_s5, 8 }
  0x18   : > { %s1983_s4 = scalar_select %p1518_p6, 1, 0 }
  0x19   : > { %s1984_s0 = sld [smem:[#allocation18_spill]]  ;;  %s173_s11 = scalar_lea.vmem [#allocation3], %s934_s7 }
  0x1a   : > { %s183_s18 = sshll.u32 %s173_s11, 4  ;;  %p1532_p8 = pnand %p1963_p7, %p59_p5  ;;  %s1536_s18 = int_to_ptr.vmem [resolvable:$true] %s183_s18 }
  0x1b   : > { %s1538_s28 = scalar_lea.sflag [#allocation4], %s169_s5 }
  0x1c   : > { %p1192_p10 = pneg %p1532_p8 }
  0x1f   : > { %s1528_s10 = scalar_lea.hbm %s1984_s0, %s954_s6  ;;  %s1195_s9 = scalar_lea.hbm %s1984_s0, 8192 }
  0x20   : > { %s1190_s8 = scalar_lea.hbm %s1528_s10, 4096  ;;  %p1196_p13 = scmp.lt.u32.totalorder %s1528_s10, %s1984_s0 }
  0x21   : > { %p1191_p9 = scmp.ne.s32.totalorder %s1528_s10, %s1190_s8  ;;  %p1197_p0 = scmp.lt.u32.totalorder %s1195_s9, %s1190_s8 }
  0x22   : > { %p1199_p5 = scmp.lt.u32.totalorder %s1190_s8, %s1528_s10 }
  0x23   : > { %p1193_p11 = pnand %p1192_p10, %p1191_p9  ;;  %p1198_p2 = por %p1197_p0, %p1196_p13 }
  0x25   : > { %p1194_p12 = pneg %p1193_p11  ;;  %p1200_p7 = por %p1199_p5, %p1198_p2 }
  0x27   : > { %p1201_p1 = pnand %p1200_p7, %p1194_p12 }
  0x29   : > { %1204 = shalt.err (!%p1201_p1)
}
  0x2a   : > { %s1205_s5 = scalar_lea.vmem %s1536_s18, 4096  ;;  %s1402_s6 = smov [#allocation3]  }
  0x2b   : > { %p1206_p9 = scmp.ne.s32.totalorder %s1536_s18, %s1205_s5  ;;  %s1210_s7 = sshll.u32 %s1402_s6, 4  ;;  %s1211_s7 = int_to_ptr.vmem [resolvable:$false] %s1210_s7 }
  0x2c   : > { %s1212_s27 = scalar_lea.vmem %s1211_s7, 8192  ;;  %p1213_p4 = scmp.lt.s32.totalorder %s1536_s18, %s1211_s7 }
  0x2d   : > { %p1208_p11 = pnand %p1206_p9, %p1192_p10  ;;  %p1214_p13 = scmp.lt.s32.totalorder %s1212_s27, %s1205_s5 }
  0x2f   : > { %p1209_p6 = pneg %p1208_p11  ;;  %p1215_p0 = por %p1214_p13, %p1213_p4 }
  0x31   : > { %p1216_p2 = pnand %p1215_p0, %p1209_p6 }
  0x33   : > { %1219 = shalt.err (!%p1216_p2)
}
  0x34   : > { %s1966_s8 = smov 256   ;;  %s1967_s9 = smov 16  }
  0x35   : > { %1062 = dma.hbm_to_vmem [thread:$0]  (!%p1532_p8), %s1528_s10, 4096, %s1536_s18, %s1538_s28, %s1966_s8, %s1966_s8, %s1967_s9  }
  0x36   : > { %p941_p1 = scmp.ge.s32.totalorder %s1400_s25, 1  ;;  %p223_p4 = scmp.lt.s32.totalorder %s1400_s25, 7 }
  0x37   : > { %s931_s5 = sadd.s32 4294967294, %s1400_s25   ;;  %s37_s6 = sadd.s32 1, %s1392_s23 }
  0x38   : > { %p1571_p6 = pnand %p941_p1, %p223_p4  ;;  %s78_s7 = sadd.s32 1, %s1368_s17 }
  0x39   : > { %p39_p7 = scmp.ge.s32.totalorder %s37_s6, 3  ;;  %p85_p10 = scmp.ne.s32.totalorder %s1368_s17, %s1364_s16 }
  0x3a   : > { %p91_p12 = scmp.ne.s32.totalorder %s1364_s16, %s1360_s15  ;;  %s132_s26 = sadd.s32 1, %s1356_s14 }
  0x3b   : > { %s2028_s6 = smov (%p39_p7, %s37_s6), 0  ;;  %s1988_s28 = sadd.s32 1, %s1396_s24 }
  0x3c   : > { %1987 = sst [smem:[#allocation14_spill]] %s2028_s6  ;;  %s2030_s28 = smov (!%p39_p7, %s1988_s28), %s1396_s24 }
  0x3d   : > { %s74_s10 = ssub.s32 %s1392_s23, %s2028_s6  ;;  %p1989_p8 = scmp.eq.s32.totalorder %s1400_s25, 0 }
  0x3e   : > { %p43_p9 = scmp.ge.s32.totalorder %s2030_s28, 2  ;;  %p76_p11 = scmp.eq.s32.totalorder %s74_s10, 0 }
  0x3f   : > { %p1592_p5 = por %p85_p10, %p1989_p8  ;;  %p1598_p13 = por %p91_p12, %p1506_p3 }
  0x40   : > { %p142_p0 = scmp.ne.s32.totalorder %s1356_s14, %s1352_s13  ;;  %s2032_s28 = smov (%p43_p9, %s2030_s28), 0 }
  0x41   : > { %s1991_s15 = scalar_select %p1598_p13, 1, 0 }
  0x42   : > { %1992 = sst [smem:[#allocation15_spill]] %s2032_s28  ;;  %s45_s8 = ssub.s32 %s1396_s24, %s2032_s28 }
  0x43   : > { %s1607_s27 = scalar_select %p76_p11, %s1368_s17, %s78_s7  }
  0x44   : > { %p1994_p2 = scmp.ne.s32.totalorder %s1982_s30, 0  ;;  %p48_p4 = scmp.eq.s32.totalorder %s45_s8, 0 }
  0x45   : > { %1993 = sst [smem:[#allocation16_spill]] %s1607_s27  ;;  %s129_s29 = sor.u32 %s74_s10, %s45_s8 }
  0x46   : > { %p1613_p1 = por %p1994_p2, %p142_p0  ;;  %p130_p3 = scmp.eq.s32.totalorder %s129_s29, 0 }
  0x47   : > { %p148_p7 = scmp.ne.s32.totalorder %s1352_s13, %s1348_s12  ;;  %s1997_s0 = sadd.s32 1, %s1380_s20 }
  0x48   : > { %s1995_s9 = scalar_select %p1613_p1, 1, 0 }
  0x49   : > { %s1622_s6 = scalar_select %p48_p4, %s1380_s20, %s1997_s0  }
  0x4a   : > { %1996 = sst [smem:[#allocation17_spill]] %s1995_s9  ;;  %p149_p10 = scmp.eq.s32.totalorder %s931_s5, 5 }
  0x4b   : > { %s1625_s3 = scalar_select %p130_p3, %s1356_s14, %s132_s26  }
  0x4c   : > { %s193_s7 = sand.u32 1, %s1368_s17   ;;  %p1628_p12 = por %p149_p10, %p148_p7 }
  0x4d   : > { %s938_s27 = sshll.u32 %s193_s7, 9  ;;  %s955_s28 = sshll.u32 %s1392_s23, 8 }
  0x4e   : > { %s1998_s30 = scalar_select %p1628_p12, 1, 0 }
  0x4f   : > { %s197_s24 = scalar_lea.vmem [#allocation6], %s938_s27  ;;  %s1636_s8 = scalar_lea.hbm %s1960_s1, %s955_s28 }
  0x50   : > { %s207_s9 = sshll.u32 %s197_s24, 4  ;;  %p1999_p8 = scmp.lt.s32.totalorder %s1400_s25, 6  ;;  %s1638_s9 = int_to_ptr.vmem [resolvable:$true] %s207_s9 }
  0x51   : > { %s1648_s24 = scalar_lea.sflag [#allocation7], %s193_s7  ;;  %s1220_s5 = scalar_lea.hbm %s1636_s8, 8192 }
  0x52   : > { %p1644_p9 = pnand %p1999_p8, %p1592_p5  ;;  %p1221_p11 = scmp.ne.s32.totalorder %s1636_s8, %s1220_s5 }
  0x53   : > { %s1225_s26 = scalar_lea.hbm %s1960_s1, 24576  ;;  %p1226_p5 = scmp.lt.u32.totalorder %s1636_s8, %s1960_s1 }
  0x54   : > { %p1222_p0 = pneg %p1644_p9  ;;  %p1227_p3 = scmp.lt.u32.totalorder %s1225_s26, %s1220_s5 }
  0x55   : > { %p1229_p10 = scmp.lt.u32.totalorder %s1220_s5, %s1636_s8 }
  0x56   : > { %p1223_p2 = pnand %p1222_p0, %p1221_p11  ;;  %p1228_p7 = por %p1227_p3, %p1226_p5 }
  0x58   : > { %p1224_p4 = pneg %p1223_p2  ;;  %p1230_p8 = por %p1229_p10, %p1228_p7 }
  0x5a   : > { %p1231_p12 = pnand %p1230_p8, %p1224_p4 }
  0x5c   : > { %1234 = shalt.err (!%p1231_p12)
}
  0x5d   : > { %s1235_s18 = scalar_lea.vmem %s1638_s9, 8192  ;;  %s1405_s27 = smov [#allocation6]  }
  0x5e   : > { %p1236_p11 = scmp.ne.s32.totalorder %s1638_s9, %s1235_s18  ;;  %s1240_s29 = sshll.u32 %s1405_s27, 4  ;;  %s1241_s29 = int_to_ptr.vmem [resolvable:$false] %s1240_s29 }
  0x5f   : > { %s1242_s7 = scalar_lea.vmem %s1241_s29, 16384  ;;  %p1243_p13 = scmp.lt.s32.totalorder %s1638_s9, %s1241_s29 }
  0x60   : > { %p1238_p2 = pnand %p1236_p11, %p1222_p0  ;;  %p1244_p5 = scmp.lt.s32.totalorder %s1242_s7, %s1235_s18 }
  0x62   : > { %p1239_p1 = pneg %p1238_p2  ;;  %p1245_p3 = por %p1244_p5, %p1243_p13 }
  0x64   : > { %p1246_p7 = pnand %p1245_p3, %p1239_p1 }
  0x66   : > { %1249 = shalt.err (!%p1246_p7)
}
  0x67   : > { %s1406_s5 = smov 768   ;;  %s2001_s2 = smov 16  }
  0x68   : > { %s2002_s22 = smov 256   ;;  %227 = sbr.rel (%p1571_p6) target bundleno = 442 (0x1ba), region = 32 }
  0x69   : > { %1065 = dma.hbm_to_vmem [thread:$0]  (!%p1644_p9), %s1636_s8, 8192, %s1638_s9, %s1648_s24, %s1406_s5, %s2002_s22, %s2001_s2  }
  0x6a   : > { %s229_s26 = sand.u32 (!%p1571_p6), 1, %s1376_s19   ;;  %p2003_p13 = scmp.ne.s32.totalorder (!%p1571_p6), %s1983_s4, 0 }
  0x6b   : > { %s942_s28 = sshll.u32 (!%p1571_p6), %s229_s26, 8  ;;  %s230_s10 = scalar_lea.sflag (!%p1571_p6), [#allocation4], %s229_s26 }
  0x6c   : > { %s1681_s18 = scalar_lea.vmem (!%p1571_p6), [#allocation3], %s942_s28 }
  0x6f   : > { %1335 = dma.done.wait (%p2003_p13), %s230_s10, 4096  }
  0x70   : > { %1337 = vsyncadd (%p2003_p13), %s230_s10, 4294963200  ;;  %s238_s0 = sand.u32 1, %s1364_s16   ;;  %p2004_p6 = scmp.ne.s32.totalorder %s1991_s15, 0 }
  0x71   : > { %s943_s27 = sshll.u32 %s238_s0, 9  ;;  %s239_s9 = scalar_lea.sflag [#allocation7], %s238_s0 }
  0x72   : > { %s1688_s8 = scalar_lea.vmem [#allocation6], %s943_s27 }
  0x73   : > { %1339 = dma.done.wait (%p2004_p6), %s239_s9, 8192  }
  0x74   : > { %1341 = vsyncadd (%p2004_p6), %s239_s9, 4294959104  ;;  %v386_v0 = vld [vmem:[%s1688_s8 + $0x8] sm:$0xff]  ;;  %v388_v1 = vld [vmem:[%s1688_s8 + $0x18] sm:$0xff]  ;;  %s1791_s4 = sshll.u32 %s1384_s21, 1  ;;  %s2005_s29 = sld [smem:[#allocation19_spill]] }
  0x75   : > { %v385_v2 = vld [vmem:[%s1688_s8] sm:$0xff]  ;;  %v956_v3 = vpack.c.bf16 %v388_v1, %v386_v0  ;;  %v387_v4 = vld [vmem:[%s1688_s8 + $0x10] sm:$0xff]  ;;  %v390_v5 = vld [vmem:[%s1688_s8 + $0x28] sm:$0xff]  ;;  %p279_p1 = scmp.lt.s32.totalorder %s1791_s4, 5  ;;  %s271_s5 = sand.u32 1, %s1352_s13  }
  0x76   : > { %v392_v6 = vld [vmem:[%s1688_s8 + $0x38] sm:$0xff]  ;;  %v958_v7 = vpack.c.bf16 %v387_v4, %v385_v2  ;;  %v389_v9 = vld [vmem:[%s1688_s8 + $0x20] sm:$0xff]  ;;  %v391_v10 = vld [vmem:[%s1688_s8 + $0x30] sm:$0xff]  ;;  %s944_s2 = sshll.u32 %s271_s5, 8  ;;  %s2006_s22 = sld [smem:[#allocation12_spill]] }
  0x77   : > { %v960_v8 = vpack.c.bf16 %v392_v6, %v390_v5  ;;  %v394_v11 = vld [vmem:[%s1688_s8 + $0x48] sm:$0xff]  ;;  %957 = vmatprep.subr.bf16.mxu0 %v956_v3  ;;  %1020 = vmatprep.subr.bf16.mxu1 %v956_v3  ;;  %v396_v12 = vld [vmem:[%s1688_s8 + $0x58] sm:$0xff]  ;;  %v962_v13 = vpack.c.bf16 %v391_v10, %v389_v9  ;;  %v393_v15 = vld [vmem:[%s1688_s8 + $0x40] sm:$0xff]  ;;  %s280_s11 = scalar_select %p279_p1, %s1791_s4, 5 }
  0x78   : > { %959 = vmatpush1.bf16.msra.mxu0 %v958_v7  ;;  %1036 = vmatpush1.bf16.msra.mxu1 %v958_v7  ;;  %v964_v14 = vpack.c.bf16 %v396_v12, %v394_v11  ;;  %v395_v16 = vld [vmem:[%s1688_s8 + $0x50] sm:$0xff]  ;;  %v398_v17 = vld [vmem:[%s1688_s8 + $0x68] sm:$0xff]  ;;  %v400_v18 = vld [vmem:[%s1688_s8 + $0x78] sm:$0xff]  ;;  %s1809_s21 = scalar_lea.vmem [#allocation8], %s944_s2  ;;  %s2007_s9 = sld [smem:[#allocation20_spill]] }
  0x79   : > { %961 = vmatprep.subr.bf16.mxu0 %v960_v8  ;;  %1021 = vmatprep.subr.bf16.mxu1 %v960_v8  ;;  %v966_v19 = vpack.c.bf16 %v395_v16, %v393_v15  ;;  %v968_v20 = vpack.c.bf16 %v400_v18, %v398_v17  ;;  %v397_v21 = vld [vmem:[%s1688_s8 + $0x60] sm:$0xff]  ;;  %v399_v22 = vld [vmem:[%s1688_s8 + $0x70] sm:$0xff]  ;;  %v402_v23 = vld [vmem:[%s1688_s8 + $0x88] sm:$0xff]  ;;  %s1407_s24 = smov [#allocation8]  }
  0x7a   : > { %v404_v24 = vld [vmem:[%s1688_s8 + $0x98] sm:$0xff]  ;;  %v970_v25 = vpack.c.bf16 %v399_v22, %v397_v21  ;;  %v401_v27 = vld [vmem:[%s1688_s8 + $0x80] sm:$0xff]  ;;  %v403_v28 = vld [vmem:[%s1688_s8 + $0x90] sm:$0xff]  ;;  %s281_s7 = scalar_lea.vmem %s2005_s29, %s280_s11  ;;  %s1883_s11 = scalar_lea.sflag [#allocation5], %s271_s5 }
  0x7b   : > { %v972_v26 = vpack.c.bf16 %v404_v24, %v402_v23  ;;  %v406_v29 = vld [vmem:[%s1688_s8 + $0xa8] sm:$0xff]  ;;  %v408_v30 = vld [vmem:[%s1688_s8 + $0xb8] sm:$0xff]  ;;  %v974_v31 = vpack.c.bf16 %v403_v28, %v401_v27  ;;  %v405_v33 = vld [vmem:[%s1688_s8 + $0xa0] sm:$0xff]  ;;  %s1254_s29 = sshll.u32 %s1407_s24, 4  ;;  %s1255_s29 = int_to_ptr.vmem [resolvable:$false] %s1254_s29 }
  0x7c   : > { %963 = vmatpush1.bf16.msra.mxu0 %v962_v13  ;;  %1037 = vmatpush1.bf16.msra.mxu1 %v962_v13  ;;  %v976_v32 = vpack.c.bf16 %v408_v30, %v406_v29  ;;  %v407_v34 = vld [vmem:[%s1688_s8 + $0xb0] sm:$0xff]  ;;  %v410_v35 = vld [vmem:[%s1688_s8 + $0xc8] sm:$0xff]  ;;  %v412_v36 = vld [vmem:[%s1688_s8 + $0xd8] sm:$0xff]  ;;  %s1052_s26 = smul.u32 96, %s2006_s22 }
  0x7d   : > { %965 = vmatprep.subr.bf16.mxu0 %v964_v14  ;;  %1022 = vmatprep.subr.bf16.mxu1 %v964_v14  ;;  %v978_v37 = vpack.c.bf16 %v407_v34, %v405_v33  ;;  %v409_v38 = vld [vmem:[%s1688_s8 + $0xc0] sm:$0xff]  ;;  %v980_v39 = vpack.c.bf16 %v412_v36, %v410_v35  ;;  %v411_v40 = vld [vmem:[%s1688_s8 + $0xd0] sm:$0xff]  ;;  %v354_v41 = vld [vmem:[%s1681_s18 + $0x8] sm:$0xff] }
  0x7e   : > { %v370_v42 = vld [vmem:[%s1681_s18 + $0x88] sm:$0xff]  ;;  %v416_v44 = vld [vmem:[%s1688_s8 + $0xf8] sm:$0xff]  ;;  %513 = vmatprep.mubr.f32.mxu0 %v354_v41  ;;  %v982_v45 = vpack.c.bf16 %v411_v40, %v409_v38  ;;  %v413_v47 = vld [vmem:[%s1688_s8 + $0xe0] sm:$0xff]  ;;  %s799_s28 = sadd.s32 %s1052_s26, %s1791_s4 }
  0x7f   : > { %v414_v43 = vld [vmem:[%s1688_s8 + $0xe8] sm:$0xff]  ;;  %561 = vmatprep.mubr.f32.mxu1 %v370_v42  ;;  %v415_v48 = vld [vmem:[%s1688_s8 + $0xf0] sm:$0xff]  ;;  %v420_v50 = vld [vmem:[%s1688_s8 + $0x118] sm:$0xff]  ;;  %s950_s10 = sshll.u32 %s799_s28, 7 }
  0x80   : > { %967 = vmatpush1.bf16.msra.mxu0 %v966_v19  ;;  %1038 = vmatpush1.bf16.msra.mxu1 %v966_v19  ;;  %v984_v46 = vpack.c.bf16 %v416_v44, %v414_v43  ;;  %v418_v49 = vld [vmem:[%s1688_s8 + $0x108] sm:$0xff]  ;;  %v986_v51 = vpack.c.bf16 %v415_v48, %v413_v47  ;;  %v417_v53 = vld [vmem:[%s1688_s8 + $0x100] sm:$0xff]  ;;  %v419_v54 = vld [vmem:[%s1688_s8 + $0x110] sm:$0xff]  ;;  %s1869_s4 = scalar_lea.hbm %s2007_s9, %s950_s10 }
  0x81   : > { %969 = vmatprep.subr.bf16.mxu0 %v968_v20  ;;  %1023 = vmatprep.subr.bf16.mxu1 %v968_v20  ;;  %v988_v52 = vpack.c.bf16 %v420_v50, %v418_v49  ;;  %v422_v55 = vld [vmem:[%s1688_s8 + $0x128] sm:$0xff]  ;;  %v424_v56 = vld [vmem:[%s1688_s8 + $0x138] sm:$0xff]  ;;  %v990_v57 = vpack.c.bf16 %v419_v54, %v417_v53  ;;  %v421_v59 = vld [vmem:[%s1688_s8 + $0x120] sm:$0xff] }
  0x82   : > { %v992_v58 = vpack.c.bf16 %v424_v56, %v422_v55  ;;  %v423_v60 = vld [vmem:[%s1688_s8 + $0x130] sm:$0xff]  ;;  %v426_v61 = vld [vmem:[%s1688_s8 + $0x148] sm:$0xff]  ;;  %v428_v62 = vld [vmem:[%s1688_s8 + $0x158] sm:$0xff] }
  0x83   : > { %v994_v63 = vpack.c.bf16 %v423_v60, %v421_v59  ;;  %v996_v0 = vpack.c.bf16 %v428_v62, %v426_v61  ;;  %v425_v1 = vld [vmem:[%s1688_s8 + $0x140] sm:$0xff]  ;;  %v427_v2 = vld [vmem:[%s1688_s8 + $0x150] sm:$0xff]  ;;  %v430_v3 = vld [vmem:[%s1688_s8 + $0x168] sm:$0xff] }
  0x84   : > { %971 = vmatpush1.bf16.msra.mxu0 %v970_v25  ;;  %1039 = vmatpush1.bf16.msra.mxu1 %v970_v25  ;;  %v432_v4 = vld [vmem:[%s1688_s8 + $0x178] sm:$0xff]  ;;  %v998_v5 = vpack.c.bf16 %v427_v2, %v425_v1  ;;  %v429_v7 = vld [vmem:[%s1688_s8 + $0x160] sm:$0xff]  ;;  %v431_v8 = vld [vmem:[%s1688_s8 + $0x170] sm:$0xff] }
  0x85   : > { %973 = vmatprep.subr.bf16.mxu0 %v972_v26  ;;  %1024 = vmatprep.subr.bf16.mxu1 %v972_v26  ;;  %v1000_v6 = vpack.c.bf16 %v432_v4, %v430_v3  ;;  %v434_v9 = vld [vmem:[%s1688_s8 + $0x188] sm:$0xff]  ;;  %v436_v10 = vld [vmem:[%s1688_s8 + $0x198] sm:$0xff]  ;;  %v1002_v11 = vpack.c.bf16 %v431_v8, %v429_v7  ;;  %v433_v13 = vld [vmem:[%s1688_s8 + $0x180] sm:$0xff] }
  0x86   : > { %v1004_v12 = vpack.c.bf16 %v436_v10, %v434_v9  ;;  %v435_v14 = vld [vmem:[%s1688_s8 + $0x190] sm:$0xff]  ;;  %v438_v15 = vld [vmem:[%s1688_s8 + $0x1a8] sm:$0xff]  ;;  %v440_v16 = vld [vmem:[%s1688_s8 + $0x1b8] sm:$0xff] }
  0x87   : > { %v1006_v17 = vpack.c.bf16 %v435_v14, %v433_v13  ;;  %v1008_v18 = vpack.c.bf16 %v440_v16, %v438_v15  ;;  %v437_v19 = vld [vmem:[%s1688_s8 + $0x1a0] sm:$0xff]  ;;  %v439_v20 = vld [vmem:[%s1688_s8 + $0x1b0] sm:$0xff]  ;;  %v442_v21 = vld [vmem:[%s1688_s8 + $0x1c8] sm:$0xff] }
  0x88   : > { %975 = vmatpush1.bf16.msra.mxu0 %v974_v31  ;;  %1040 = vmatpush1.bf16.msra.mxu1 %v974_v31  ;;  %v444_v22 = vld [vmem:[%s1688_s8 + $0x1d8] sm:$0xff]  ;;  %v1010_v23 = vpack.c.bf16 %v439_v20, %v437_v19  ;;  %v441_v25 = vld [vmem:[%s1688_s8 + $0x1c0] sm:$0xff]  ;;  %v443_v26 = vld [vmem:[%s1688_s8 + $0x1d0] sm:$0xff] }
  0x89   : > { %977 = vmatprep.subr.bf16.mxu0 %v976_v32  ;;  %1025 = vmatprep.subr.bf16.mxu1 %v976_v32  ;;  %v1012_v24 = vpack.c.bf16 %v444_v22, %v442_v21  ;;  %v446_v27 = vld [vmem:[%s1688_s8 + $0x1e8] sm:$0xff]  ;;  %v448_v28 = vld [vmem:[%s1688_s8 + $0x1f8] sm:$0xff]  ;;  %v1014_v29 = vpack.c.bf16 %v443_v26, %v441_v25  ;;  %v445_v31 = vld [vmem:[%s1688_s8 + $0x1e0] sm:$0xff] }
  0x8a   : > { %v1016_v30 = vpack.c.bf16 %v448_v28, %v446_v27  ;;  %v447_v32 = vld [vmem:[%s1688_s8 + $0x1f0] sm:$0xff]  ;;  %v353_v34 = vld [vmem:[%s1681_s18] sm:$0xff]  ;;  %v356_v36 = vld [vmem:[%s1681_s18 + $0x18] sm:$0xff]  ;;  %s2008_s8 = sld [smem:[#allocation17_spill]] }
  0x8b   : > { %v1018_v33 = vpack.c.bf16 %v447_v32, %v445_v31  ;;  %v369_v35 = vld [vmem:[%s1681_s18 + $0x80] sm:$0xff]  ;;  %v355_v38 = vld [vmem:[%s1681_s18 + $0x10] sm:$0xff]  ;;  %v358_v40 = vld [vmem:[%s1681_s18 + $0x28] sm:$0xff] }
  0x8c   : > { %979 = vmatpush1.bf16.msra.mxu0 %v978_v37  ;;  %1041 = vmatpush1.bf16.msra.mxu1 %v978_v37  ;;  %v372_v37 = vld [vmem:[%s1681_s18 + $0x98] sm:$0xff]  ;;  %v374_v41 = vld [vmem:[%s1681_s18 + $0xa8] sm:$0xff]  ;;  %v357_v42 = vld [vmem:[%s1681_s18 + $0x20] sm:$0xff] }
  0x8d   : > { %981 = vmatprep.subr.bf16.mxu0 %v980_v39  ;;  %1026 = vmatprep.subr.bf16.mxu1 %v980_v39  ;;  %v371_v39 = vld [vmem:[%s1681_s18 + $0x90] sm:$0xff]  ;;  %v373_v43 = vld [vmem:[%s1681_s18 + $0xa0] sm:$0xff]  ;;  %v360_v44 = vld [vmem:[%s1681_s18 + $0x38] sm:$0xff] }
  0x8e   : > { %v375_v47 = vld [vmem:[%s1681_s18 + $0xb0] sm:$0xff]  ;;  %v362_v48 = vld [vmem:[%s1681_s18 + $0x48] sm:$0xff]  ;;  %v361_v50 = vld [vmem:[%s1681_s18 + $0x40] sm:$0xff] }
  0x8f   : > { %v378_v49 = vld [vmem:[%s1681_s18 + $0xc8] sm:$0xff]  ;;  %v380_v53 = vld [vmem:[%s1681_s18 + $0xd8] sm:$0xff]  ;;  %v363_v54 = vld [vmem:[%s1681_s18 + $0x50] sm:$0xff] }
  0x90   : > { %983 = vmatpush1.bf16.msra.mxu0 %v982_v45  ;;  %1042 = vmatpush1.bf16.msra.mxu1 %v982_v45  ;;  %v376_v45 = vld [vmem:[%s1681_s18 + $0xb8] sm:$0xff]  ;;  %v379_v55 = vld [vmem:[%s1681_s18 + $0xd0] sm:$0xff]  ;;  %v366_v56 = vld [vmem:[%s1681_s18 + $0x68] sm:$0xff]  ;;  %p2009_p9 = scmp.ne.s32.totalorder %s2008_s8, 0 }
  0x91   : > { %985 = vmatprep.subr.bf16.mxu0 %v984_v46  ;;  %1027 = vmatprep.subr.bf16.mxu1 %v984_v46  ;;  %v359_v46 = vld [vmem:[%s1681_s18 + $0x30] sm:$0xff]  ;;  %v381_v59 = vld [vmem:[%s1681_s18 + $0xe0] sm:$0xff]  ;;  %v368_v60 = vld [vmem:[%s1681_s18 + $0x78] sm:$0xff] }
  0x92   : > { %v384_v61 = vld [vmem:[%s1681_s18 + $0xf8] sm:$0xff]  ;;  %v367_v62 = vld [vmem:[%s1681_s18 + $0x70] sm:$0xff]  ;;  %v709_v3 = vld [vmem:[%s281_s7] sm:$0x3]  ;;  %s1256_s7 = scalar_lea.vmem %s1255_s29, 8192 }
  0x94   : > { %987 = vmatpush1.bf16.msra.mxu0 %v986_v51  ;;  %1043 = vmatpush1.bf16.msra.mxu1 %v986_v51  ;;  %v377_v51 = vld [vmem:[%s1681_s18 + $0xc0] sm:$0xff] }
  0x95   : > { %989 = vmatprep.subr.bf16.mxu0 %v988_v52  ;;  %1028 = vmatprep.subr.bf16.mxu1 %v988_v52  ;;  %v364_v52 = vld [vmem:[%s1681_s18 + $0x58] sm:$0xff] }
  0x98   : > { %991 = vmatpush1.bf16.msra.mxu0 %v990_v57  ;;  %1044 = vmatpush1.bf16.msra.mxu1 %v990_v57  ;;  %v382_v57 = vld [vmem:[%s1681_s18 + $0xe8] sm:$0xff] }
  0x99   : > { %993 = vmatprep.subr.bf16.mxu0 %v992_v58  ;;  %1029 = vmatprep.subr.bf16.mxu1 %v992_v58  ;;  %v365_v58 = vld [vmem:[%s1681_s18 + $0x60] sm:$0xff] }
  0x9c   : > { %995 = vmatpush1.bf16.msra.mxu0 %v994_v63  ;;  %1045 = vmatpush1.bf16.msra.mxu1 %v994_v63  ;;  %v383_v63 = vld [vmem:[%s1681_s18 + $0xf0] sm:$0xff]  ;;  %s802_s18 = sshll.u32 %s1809_s21, 4  ;;  %s1873_s18 = int_to_ptr.vmem [resolvable:$true] %s802_s18 }
  0x9d   : > { %997 = vmatprep.subr.bf16.mxu0 %v996_v0  ;;  %1030 = vmatprep.subr.bf16.mxu1 %v996_v0  ;;  %v711_v0 = vlaneseq  ;;  %s1250_s15 = scalar_lea.vmem %s1873_s18, 4096  ;;  %p1257_p10 = scmp.lt.s32.totalorder %s1873_s18, %s1255_s29 }
  0x9e   : > { %p1251_p12 = scmp.ne.s32.totalorder %s1873_s18, %s1250_s15  ;;  %p1258_p8 = scmp.lt.s32.totalorder %s1256_s7, %s1250_s15 }
  0x9f   : > { %v712_v1 = vshrl.u32 %v711_v0, 7 }
  0xa0   : > { %999 = vmatpush1.bf16.msra.mxu0 %v998_v5  ;;  %1046 = vmatpush1.bf16.msra.mxu1 %v998_v5  ;;  %p1252_p0 = pnand %p1251_p12, %p2009_p9  ;;  %p1259_p11 = por %p1258_p8, %p1257_p10 }
  0xa1   : > { %1001 = vmatprep.subr.bf16.mxu0 %v1000_v6  ;;  %1031 = vmatprep.subr.bf16.mxu1 %v1000_v6  ;;  %v713_v2 = vsub.s32 0, %v712_v1  ;;  %v717_v4 = vsub.s32 1, %v712_v1 }
  0xa2   : > { %p1253_p4 = pneg %p1252_p0 }
  0xa3   : > { %v1801_v5 = vrot.slane %v709_v3, %v713_v2  ;;  %v1803_v6 = vrot.slane %v709_v3, %v717_v4 }
  0xa4   : > { %1003 = vmatpush1.bf16.msra.mxu0 %v1002_v11  ;;  %1047 = vmatpush1.bf16.msra.mxu1 %v1002_v11  ;;  %p1260_p2 = pnand %p1259_p11, %p1253_p4 }
  0xa5   : > { %1005 = vmatprep.subr.bf16.mxu0 %v1004_v12  ;;  %1032 = vmatprep.subr.bf16.mxu1 %v1004_v12 }
  0xa8   : > { %1007 = vmatpush1.bf16.msra.mxu0 %v1006_v17  ;;  %1048 = vmatpush1.bf16.msra.mxu1 %v1006_v17 }
  0xa9   : > { %1009 = vmatprep.subr.bf16.mxu0 %v1008_v18  ;;  %1033 = vmatprep.subr.bf16.mxu1 %v1008_v18 }
  0xac   : > { %1011 = vmatpush1.bf16.msra.mxu0 %v1010_v23  ;;  %1049 = vmatpush1.bf16.msra.mxu1 %v1010_v23 }
  0xad   : > { %1013 = vmatprep.subr.bf16.mxu0 %v1012_v24  ;;  %1034 = vmatprep.subr.bf16.mxu1 %v1012_v24 }
  0xb0   : > { %1015 = vmatpush1.bf16.msra.mxu0 %v1014_v29  ;;  %1050 = vmatpush1.bf16.msra.mxu1 %v1014_v29 }
  0xb1   : > { %1017 = vmatprep.subr.bf16.mxu0 %v1016_v30  ;;  %1035 = vmatprep.subr.bf16.mxu1 %v1016_v30 }
  0xb4   : > { %1019 = vmatpush1.bf16.msra.mxu0 %v1018_v33  ;;  %1051 = vmatpush1.bf16.msra.mxu1 %v1018_v33 }
  0xb7   : > { %514 = vmatmul.mubr.f32.vlgmr.msra.gmra.mrb[0].mxu0 %v353_v34  ;;  %562 = vmatmul.mubr.f32.vlgmr.msra.gmra.mrb[0].mxu1 %v369_v35 }
  0xb8   : > { %519 = vmatprep.mubr.f32.mxu0 %v356_v36  ;;  %567 = vmatprep.mubr.f32.mxu1 %v372_v37 }
  0xbb   : > { %520 = vmatmul.mubr.f32.gmra.mrb[2].mxu0 %v355_v38  ;;  %568 = vmatmul.mubr.f32.gmra.mrb[2].mxu1 %v371_v39 }
  0xbc   : > { %525 = vmatprep.mubr.f32.mxu0 %v358_v40  ;;  %573 = vmatprep.mubr.f32.mxu1 %v374_v41 }
  0xbf   : > { %526 = vmatmul.mubr.f32.gmra.mrb[4].mxu0 %v357_v42  ;;  %574 = vmatmul.mubr.f32.gmra.mrb[4].mxu1 %v373_v43 }
  0xc0   : > { %531 = vmatprep.mubr.f32.mxu0 %v360_v44  ;;  %579 = vmatprep.mubr.f32.mxu1 %v376_v45 }
  0xc3   : > { %532 = vmatmul.mubr.f32.gmra.mrb[6].mxu0 %v359_v46  ;;  %580 = vmatmul.mubr.f32.gmra.mrb[6].mxu1 %v375_v47 }
  0xc4   : > { %537 = vmatprep.mubr.f32.mxu0 %v362_v48  ;;  %585 = vmatprep.mubr.f32.mxu1 %v378_v49 }
  0xc7   : > { %538 = vmatmul.mubr.f32.gmra.mrb[8].mxu0 %v361_v50  ;;  %586 = vmatmul.mubr.f32.gmra.mrb[8].mxu1 %v377_v51 }
  0xc8   : > { %543 = vmatprep.mubr.f32.mxu0 %v364_v52  ;;  %591 = vmatprep.mubr.f32.mxu1 %v380_v53 }
  0xcb   : > { %544 = vmatmul.mubr.f32.gmra.mrb[10].mxu0 %v363_v54  ;;  %592 = vmatmul.mubr.f32.gmra.mrb[10].mxu1 %v379_v55 }
  0xcc   : > { %549 = vmatprep.mubr.f32.mxu0 %v366_v56  ;;  %597 = vmatprep.mubr.f32.mxu1 %v382_v57 }
  0xcf   : > { %550 = vmatmul.mubr.f32.gmra.mrb[12].mxu0 %v365_v58  ;;  %598 = vmatmul.mubr.f32.gmra.mrb[12].mxu1 %v381_v59 }
  0xd0   : > { %555 = vmatprep.mubr.f32.mxu0 %v368_v60  ;;  %603 = vmatprep.mubr.f32.mxu1 %v384_v61 }
  0xd3   : > { %556 = vmatmul.mubr.f32.gmra.mrb[14].mxu0 %v367_v62  ;;  %604 = vmatmul.mubr.f32.gmra.mrb[14].mxu1 %v383_v63 }
 0x18a   : > { %v515_v7 = vpop.f32.mrb[0].mxu0  ;;  %v563_v8 = vpop.f32.mrb[0].mxu1 }
 0x18b   : > { %v721_v9 = vadd.f32 %v1801_v5, %v515_v7  ;;  %v737_v10 = vadd.f32 %v1801_v5, %v563_v8  ;;  %v517_v11 = vpop.f32.mrb[1].mxu0  ;;  %v565_v12 = vpop.f32.mrb[1].mxu1 }
 0x18c   : > { %v722_v13 = vadd.f32 %v1803_v6, %v517_v11  ;;  %v738_v14 = vadd.f32 %v1803_v6, %v565_v12 }
 0x18d   : > { %753 = vst [vmem:[%s1809_s21] sm:$0xff] %v721_v9  ;;  %769 = vst [vmem:[%s1809_s21 + $0x80] sm:$0xff] %v737_v10 }
 0x18e   : > { %754 = vst [vmem:[%s1809_s21 + $0x8] sm:$0xff] %v722_v13  ;;  %770 = vst [vmem:[%s1809_s21 + $0x88] sm:$0xff] %v738_v14  ;;  %v521_v15 = vpop.f32.mrb[2].mxu0  ;;  %v569_v16 = vpop.f32.mrb[2].mxu1 }
 0x18f   : > { %v723_v17 = vadd.f32 %v1801_v5, %v521_v15  ;;  %v739_v18 = vadd.f32 %v1801_v5, %v569_v16  ;;  %v523_v19 = vpop.f32.mrb[3].mxu0  ;;  %v571_v20 = vpop.f32.mrb[3].mxu1 }
 0x190   : > { %v724_v21 = vadd.f32 %v1803_v6, %v523_v19  ;;  %v740_v22 = vadd.f32 %v1803_v6, %v571_v20 }
 0x191   : > { %755 = vst [vmem:[%s1809_s21 + $0x10] sm:$0xff] %v723_v17  ;;  %771 = vst [vmem:[%s1809_s21 + $0x90] sm:$0xff] %v739_v18 }
 0x192   : > { %756 = vst [vmem:[%s1809_s21 + $0x18] sm:$0xff] %v724_v21  ;;  %772 = vst [vmem:[%s1809_s21 + $0x98] sm:$0xff] %v740_v22  ;;  %v527_v23 = vpop.f32.mrb[4].mxu0  ;;  %v575_v24 = vpop.f32.mrb[4].mxu1 }
 0x193   : > { %v725_v25 = vadd.f32 %v1801_v5, %v527_v23  ;;  %v741_v26 = vadd.f32 %v1801_v5, %v575_v24  ;;  %v529_v27 = vpop.f32.mrb[5].mxu0  ;;  %v577_v28 = vpop.f32.mrb[5].mxu1 }
 0x194   : > { %v726_v29 = vadd.f32 %v1803_v6, %v529_v27  ;;  %v742_v30 = vadd.f32 %v1803_v6, %v577_v28 }
 0x195   : > { %757 = vst [vmem:[%s1809_s21 + $0x20] sm:$0xff] %v725_v25  ;;  %773 = vst [vmem:[%s1809_s21 + $0xa0] sm:$0xff] %v741_v26 }
 0x196   : > { %758 = vst [vmem:[%s1809_s21 + $0x28] sm:$0xff] %v726_v29  ;;  %774 = vst [vmem:[%s1809_s21 + $0xa8] sm:$0xff] %v742_v30  ;;  %v533_v31 = vpop.f32.mrb[6].mxu0  ;;  %v581_v32 = vpop.f32.mrb[6].mxu1 }
 0x197   : > { %v727_v33 = vadd.f32 %v1801_v5, %v533_v31  ;;  %v743_v34 = vadd.f32 %v1801_v5, %v581_v32  ;;  %v535_v35 = vpop.f32.mrb[7].mxu0  ;;  %v583_v36 = vpop.f32.mrb[7].mxu1 }
 0x198   : > { %v728_v37 = vadd.f32 %v1803_v6, %v535_v35  ;;  %v744_v38 = vadd.f32 %v1803_v6, %v583_v36 }
 0x199   : > { %759 = vst [vmem:[%s1809_s21 + $0x30] sm:$0xff] %v727_v33  ;;  %775 = vst [vmem:[%s1809_s21 + $0xb0] sm:$0xff] %v743_v34 }
 0x19a   : > { %760 = vst [vmem:[%s1809_s21 + $0x38] sm:$0xff] %v728_v37  ;;  %776 = vst [vmem:[%s1809_s21 + $0xb8] sm:$0xff] %v744_v38  ;;  %v539_v39 = vpop.f32.mrb[8].mxu0  ;;  %v587_v40 = vpop.f32.mrb[8].mxu1 }
 0x19b   : > { %v729_v41 = vadd.f32 %v1801_v5, %v539_v39  ;;  %v745_v42 = vadd.f32 %v1801_v5, %v587_v40  ;;  %v541_v43 = vpop.f32.mrb[9].mxu0  ;;  %v589_v44 = vpop.f32.mrb[9].mxu1 }
 0x19c   : > { %v730_v45 = vadd.f32 %v1803_v6, %v541_v43  ;;  %v746_v46 = vadd.f32 %v1803_v6, %v589_v44 }
 0x19d   : > { %761 = vst [vmem:[%s1809_s21 + $0x40] sm:$0xff] %v729_v41  ;;  %777 = vst [vmem:[%s1809_s21 + $0xc0] sm:$0xff] %v745_v42 }
 0x19e   : > { %762 = vst [vmem:[%s1809_s21 + $0x48] sm:$0xff] %v730_v45  ;;  %778 = vst [vmem:[%s1809_s21 + $0xc8] sm:$0xff] %v746_v46  ;;  %v545_v47 = vpop.f32.mrb[10].mxu0  ;;  %v593_v48 = vpop.f32.mrb[10].mxu1 }
 0x19f   : > { %v731_v49 = vadd.f32 %v1801_v5, %v545_v47  ;;  %v747_v50 = vadd.f32 %v1801_v5, %v593_v48  ;;  %v547_v51 = vpop.f32.mrb[11].mxu0  ;;  %v595_v52 = vpop.f32.mrb[11].mxu1 }
 0x1a0   : > { %v732_v53 = vadd.f32 %v1803_v6, %v547_v51  ;;  %v748_v54 = vadd.f32 %v1803_v6, %v595_v52 }
 0x1a1   : > { %763 = vst [vmem:[%s1809_s21 + $0x50] sm:$0xff] %v731_v49  ;;  %779 = vst [vmem:[%s1809_s21 + $0xd0] sm:$0xff] %v747_v50 }
 0x1a2   : > { %764 = vst [vmem:[%s1809_s21 + $0x58] sm:$0xff] %v732_v53  ;;  %780 = vst [vmem:[%s1809_s21 + $0xd8] sm:$0xff] %v748_v54  ;;  %v551_v55 = vpop.f32.mrb[12].mxu0  ;;  %v599_v56 = vpop.f32.mrb[12].mxu1 }
 0x1a3   : > { %v733_v57 = vadd.f32 %v1801_v5, %v551_v55  ;;  %v749_v58 = vadd.f32 %v1801_v5, %v599_v56  ;;  %v553_v59 = vpop.f32.mrb[13].mxu0  ;;  %v601_v60 = vpop.f32.mrb[13].mxu1 }
 0x1a4   : > { %v734_v61 = vadd.f32 %v1803_v6, %v553_v59  ;;  %v750_v62 = vadd.f32 %v1803_v6, %v601_v60 }
 0x1a5   : > { %765 = vst [vmem:[%s1809_s21 + $0x60] sm:$0xff] %v733_v57  ;;  %781 = vst [vmem:[%s1809_s21 + $0xe0] sm:$0xff] %v749_v58 }
 0x1a6   : > { %766 = vst [vmem:[%s1809_s21 + $0x68] sm:$0xff] %v734_v61  ;;  %782 = vst [vmem:[%s1809_s21 + $0xe8] sm:$0xff] %v750_v62  ;;  %v557_v63 = vpop.f32.mrb[14].mxu0  ;;  %v605_v0 = vpop.f32.mrb[14].mxu1 }
 0x1a7   : > { %v735_v1 = vadd.f32 %v1801_v5, %v557_v63  ;;  %v751_v2 = vadd.f32 %v1801_v5, %v605_v0  ;;  %v559_v3 = vpop.f32.mrb[15].mxu0  ;;  %v607_v4 = vpop.f32.mrb[15].mxu1 }
 0x1a8   : > { %v736_v7 = vadd.f32 %v1803_v6, %v559_v3  ;;  %v752_v8 = vadd.f32 %v1803_v6, %v607_v4 }
 0x1a9   : > { %767 = vst [vmem:[%s1809_s21 + $0x70] sm:$0xff] %v735_v1  ;;  %783 = vst [vmem:[%s1809_s21 + $0xf0] sm:$0xff] %v751_v2 }
 0x1aa   : > { %768 = vst [vmem:[%s1809_s21 + $0x78] sm:$0xff] %v736_v7  ;;  %784 = vst [vmem:[%s1809_s21 + $0xf8] sm:$0xff] %v752_v8 }
 0x1ab   : > { %1263 = shalt.err (!%p1260_p2)
}
 0x1ac   : > { %s1264_s5 = scalar_lea.hbm %s1869_s4, 4096  ;;  %s1268_s22 = scalar_lea.hbm %s2007_s9, 24576 }
 0x1ad   : > { %p1265_p5 = scmp.ne.s32.totalorder %s1869_s4, %s1264_s5  ;;  %p1269_p13 = scmp.lt.u32.totalorder %s1869_s4, %s2007_s9 }
 0x1ae   : > { %p1270_p6 = scmp.lt.u32.totalorder %s1268_s22, %s1264_s5  ;;  %p1272_p12 = scmp.lt.u32.totalorder %s1264_s5, %s1869_s4 }
 0x1af   : > { %p1266_p3 = pnand %p1265_p5, %p2009_p9 }
 0x1b0   : > { %p1271_p1 = por %p1270_p6, %p1269_p13 }
 0x1b1   : > { %p1267_p7 = pneg %p1266_p3 }
 0x1b2   : > { %p1273_p0 = por %p1272_p12, %p1271_p1 }
 0x1b4   : > { %p1274_p4 = pnand %p1273_p0, %p1267_p7 }
 0x1b6   : > { %1277 = shalt.err (!%p1274_p4)
}
 0x1b7   : > { %s1408_s10 = smov 256   ;;  %s1409_s0 = smov 768  }
 0x1b8   : > { %s1410_s27 = smov 16  }
 0x1b9   : > { %1057 = dma.vmem_to_hbm [thread:$0]  (%p2009_p9), %s1873_s18, 4096, %s1869_s4, %s1883_s11, %s1408_s10, %s1409_s0, %s1410_s27  }
 0x1ba PF: > { %p1071_p10 = scmp.ge.s32.totalorder %s1400_s25, 2  ;;  %s817_s15 = sand.u32 1, %s1348_s12  }
 0x1bb   : > { %p2010_p8 = scmp.ne.s32.totalorder %s1998_s30, 0  ;;  %s818_s24 = scalar_lea.sflag [#allocation5], %s817_s15 }
 0x1bd   : > { %p1067_p11 = pnand %p1071_p10, %p2010_p8 }
 0x1bf   : > { %1343 = dma.done.wait (!%p1067_p11), %s818_s24, 4096  }
 0x1c0   : > { %1345 = vsyncadd (!%p1067_p11), %s818_s24, 4294963200  ;;  %s22_s25 = sadd.s32 1, %s1400_s25   ;;  %s2012_s18 = sld [smem:[#allocation16_spill]] }
 0x1c1   : > { %p1912_p2 = scmp.ge.s32.totalorder %s22_s25, 8   ;;  %s2013_s22 = sld [smem:[#allocation13_spill]] }
 0x1c2   : > { %s2014_s30 = sld [smem:[#allocation14_spill]]  ;;  %s2015_s24 = sld [smem:[#allocation15_spill]] }
 0x1c3   : > { %s2016_s12 = smov %s1352_s13  ;;  %s2017_s13 = smov %s1356_s14 }
 0x1c4   : > { %s2018_s14 = smov %s1625_s3  ;;  %s2019_s15 = smov %s1364_s16 }
 0x1c5   : > { %s2020_s16 = smov %s1368_s17  ;;  %s2025_s21 = smov %s1392_s23 }
 0x1c6   : > { %s2021_s17 = smov %s2012_s18  ;;  %s2022_s18 = smov %s1376_s19 }
 0x1c7   : > { %s2023_s19 = smov %s1380_s20  ;;  %s2024_s20 = smov %s1622_s6 }
 0x1c8   : > { %s2026_s23 = smov %s2014_s30  ;;  %21 = sbr.rel (!%p1912_p2) target bundleno = 16 (0x10), region = 101 }
 0x1cf   :  { %823 = vsyncpa [#allocation4], 1 }
 0x1d0   :  { %825 = vsyncpa [#allocation4 + $0x1], 1 }
 0x1d1   :  { %826 = vsyncpa [#allocation7], 1 }
 0x1d2   :  { %828 = vsyncpa [#allocation7 + $0x1], 1 }
 0x1d3   :  { %829 = vsyncpa [#allocation5], 1 }
 0x1d4   :  { %831 = vsyncpa [#allocation5 + $0x1], 1 }

</bundles_post_ra>
